<compile_context>
chip_gen: v6e
topology: v6e:2x2x1
jax: 0.10.0
libtpu: 0.0.40
codegen_flags: <defaults>
</compile_context>

<pallas_src>
import functools

import jax
import jax.numpy as jnp
from jax.experimental import pallas as pl
from jax.experimental.pallas import tpu as pltpu


# ----------------------------------------------------------------------------
# Kernel
# ----------------------------------------------------------------------------
def _phi_fused_kernel(x_ref, w1_ref, b1_ref, w3_ref, b3_ref,
                      ml_ref, mr_ref, o_ref, *, feat, ci, c4, c3_scale):
    """Fused Phi forward for one batch-block.

    Channel blocks are PERMUTED to [c0 | c1 | c3 | c2] (weights permuted in the
    wrapper) so the two left-mixed blocks (c1, c3) are sublane-adjacent.

    x_ref : (1, Ci, L) f32      L = bblk * H * W (lane axis = (b, h, w))
    w1_ref: (C4, Ci) f32   b1_ref: (C4, 1) f32
    w3_ref: (C4, C4) bf16  b3_ref: (C4, 1) f32
    ml_ref: (L, L) bf16    lane-mixing for  ex @ A / n1
    mr_ref: (L, L) bf16    lane-mixing for  A @ ex / n2
    o_ref : (1, C4, L) f32
    """
    f32 = jnp.float32
    bf16 = jnp.bfloat16
    F = feat

    # --- conv1 (1x1) + ReLU on the VPU: K = Ci is far below MXU depth, so a
    #     short unrolled chain of broadcast FMAs beats an MXU push/pop. -------
    x = x_ref[0]                                     # (Ci, L) f32
    L = x.shape[-1]
    w1 = w1_ref[...]                                 # (C4, Ci) f32
    y = jnp.broadcast_to(b1_ref[...], (c4, L))
    for i in range(ci):                              # static unroll (Ci small)
        y = y + w1[:, i:i + 1] * x[i:i + 1, :]
    y = jnp.maximum(y, 0.0)                          # (C4, L) f32

    def postprocess(y):
        # y channel blocks (permuted): [c0 | c1 | c3 | c2].
        # left mix: rows F..3F are exactly [c1 ; c3] -> one (2F,L)@(L,L) matmul.
        left = jnp.dot(y[F:3 * F].astype(bf16), ml_ref[...],
                       preferred_element_type=f32)   # [c1@ml ; c3@ml]
        # right mix: [c2 ; c3@ml] -> one (2F,L)@(L,L) matmul.
        rin = jnp.concatenate([y[3 * F:4 * F], left[F:2 * F]],
                              axis=0).astype(bf16)
        right = jnp.dot(rin, mr_ref[...],
                        preferred_element_type=f32)  # [c2@mr ; c3@ml@mr]
        c3 = right[F:2 * F]
        if c3_scale != 1.0:                          # static Python branch
            c3 = c3 * c3_scale
        # return in permuted order: c0, c1, c3, c2
        return y[:F], left[:F], c3, right[:F]

    p0, p1, p2, p3 = postprocess(y)

    # --- conv3 (1x1) + ReLU on the MXU (bf16 operands, f32 accumulation) -----
    r = jnp.concatenate([p0, p1, p2, p3], axis=0).astype(bf16)   # (C4, L)
    y2 = jnp.dot(w3_ref[...], r, preferred_element_type=f32) + b3_ref[...]
    y2 = jnp.maximum(y2, 0.0)

    q0, q1, q2, q3 = postprocess(y2)
    # Store each F-row block directly: 8-sublane aligned, lane-dense stores.
    o_ref[0, 0 * F:1 * F] = q0
    o_ref[0, 1 * F:2 * F] = q1
    o_ref[0, 2 * F:3 * F] = q2
    o_ref[0, 3 * F:4 * F] = q3


# ----------------------------------------------------------------------------
# Wrapper (plain-JAX glue: layout + mixing-matrix / weight-permutation prep)
# ----------------------------------------------------------------------------
def _default_max_lanes():
    """MXU pass width: 128 on <= v5, 256 on v6e / v7x."""
    try:
        kind = jax.devices()[0].device_kind.lower()
    except Exception:
        return 256
    if any(tag in kind for tag in ("v2", "v3", "v4", "v5")):
        return 128
    return 256


def _pick_batch_block(batch, hw, max_lanes):
    """Largest divisor of `batch` whose block has <= max_lanes lanes, preferring
    choices that leave >= 2 grid steps (so v7x's 2nd TensorCore gets work)."""
    cands = [bb for bb in range(1, batch + 1)
             if batch % bb == 0 and bb * hw <= max_lanes]
    if not cands:
        return 1
    multi = [bb for bb in cands if batch // bb >= 2]
    return max(multi) if multi else max(cands)


def phi_forward(x, w1, b1, w3, b3, ex, feat, n1, n2, n3, max_lanes=None):
    B, Ci, H, W = x.shape
    C4 = 4 * feat
    assert w1.shape == (C4, Ci), w1.shape
    assert w3.shape == (C4, C4), w3.shape
    assert ex.shape == (H, W) and H == W, (ex.shape, H, W)

    f32 = jnp.float32
    bf16 = jnp.bfloat16

    hw = H * W
    if max_lanes is None:
        max_lanes = _default_max_lanes()
    bblk = _pick_batch_block(B, hw, max_lanes)
    nb = B // bblk
    L = bblk * hw

    # Channel permutation [c0 | c1 | c3 | c2] (its own inverse: swaps blk 2/3).
    perm = jnp.asarray(list(range(0, feat)) + list(range(feat, 2 * feat))
                       + list(range(3 * feat, 4 * feat))
                       + list(range(2 * feat, 3 * feat)), dtype=jnp.int32)
    w1p = w1.astype(f32)[perm, :]                    # VPU path: stays f32
    b1p = b1.astype(f32)[perm, :]
    w3p = w3.astype(f32)[perm, :][:, perm].astype(bf16)
    b3p = b3.astype(f32)[perm, :]

    # Lane-axis mixing matrices (lane = b_local*H*W + h*W + w), scales folded:
    #   y @ m_left  == flatten(ex @ A) / n1
    #   y @ m_right == flatten(A @ ex) / n2
    #   y @ m_left @ m_right == flatten(ex @ A @ ex) / (n1*n2)
    ex32 = ex.astype(f32)
    eye_b = jnp.eye(bblk, dtype=f32)
    m_left = (jnp.kron(eye_b, jnp.kron(ex32.T, jnp.eye(W, dtype=f32)))
              / float(n1)).astype(bf16)
    m_right = (jnp.kron(jnp.eye(bblk * H, dtype=f32), ex32)
               / float(n2)).astype(bf16)
    c3_scale = (float(n1) * float(n2)) / float(n3)   # == 1.0 for this module

    # (B, Ci, H, W) -> (nb, Ci, L). With bblk == 1 this is a pure reshape
    # (no HBM transpose pass).
    if bblk == 1:
        x3 = x.astype(f32).reshape(B, Ci, hw)
    else:
        x3 = (x.astype(f32).reshape(nb, bblk, Ci, hw)
               .transpose(0, 2, 1, 3).reshape(nb, Ci, L))

    kernel = functools.partial(_phi_fused_kernel, feat=feat, ci=Ci, c4=C4,
                               c3_scale=c3_scale)

    # VMEM budget (double-buffered inputs/outputs + in-kernel slabs + margin).
    buf = (Ci * L * 4 + C4 * Ci * 4 + C4 * 4 + C4 * C4 * 2 + C4 * 4
           + 2 * L * L * 2 + C4 * L * 4)
    vmem_limit = int(min(max(3 * buf + 8 * C4 * L * 4 + (8 << 20), 16 << 20),
                         64 << 20))

    out3 = pl.pallas_call(
        kernel,
        out_shape=jax.ShapeDtypeStruct((nb, C4, L), f32),
        grid=(nb,),
        in_specs=[
            pl.BlockSpec((1, Ci, L), lambda i: (i, 0, 0)),
            pl.BlockSpec((C4, Ci), lambda i: (0, 0)),
            pl.BlockSpec((C4, 1), lambda i: (0, 0)),
            pl.BlockSpec((C4, C4), lambda i: (0, 0)),
            pl.BlockSpec((C4, 1), lambda i: (0, 0)),
            pl.BlockSpec((L, L), lambda i: (0, 0)),
            pl.BlockSpec((L, L), lambda i: (0, 0)),
        ],
        out_specs=pl.BlockSpec((1, C4, L), lambda i: (i, 0, 0)),
        compiler_params=pltpu.CompilerParams(
            dimension_semantics=("parallel",),
            vmem_limit_bytes=vmem_limit),
    )(x3, w1p, b1p, w3p, b3p, m_left, m_right)

    # Undo the channel permutation (perm is its own inverse), restore NCHW.
    out3 = out3[:, perm, :]
    if bblk == 1:
        return out3.reshape(B, C4, H, W)
    return (out3.reshape(nb, C4, bblk, hw)
                .transpose(0, 2, 1, 3)
                .reshape(B, C4, H, W))


# ----------------------------------------------------------------------------
# Pure-JAX reference (mirrors the PyTorch Phi.forward semantics, NCHW, f32)
# ----------------------------------------------------------------------------
def phi_reference(x, w1, b1, w3, b3, ex, feat, n1, n2, n3):
    hp = jax.lax.Precision.HIGHEST

    def conv(y, w, b):
        out = jnp.einsum('oi,bihw->bohw', w, y, precision=hp) + b[None, :, :, None]
        return jnp.maximum(out, 0.0)

    def post(y):
        c0 = y[:, :feat]
        c1 = jnp.einsum('ph,bchw->bcpw', ex, y[:, feat:2 * feat], precision=hp) / n1
        c2 = jnp.einsum('bchw,wq->bchq', y[:, 2 * feat:3 * feat], ex, precision=hp) / n2
        t = jnp.einsum('ph,bchw->bcpw', ex, y[:, 3 * feat:4 * feat], precision=hp)
        c3 = jnp.einsum('bchw,wq->bchq', t, ex, precision=hp) / n3
        return jnp.concatenate([c0, c1, c2, c3], axis=1)

    r = post(conv(x, w1, b1))
    r = post(conv(r, w3, b3))
    return r


# ----------------------------------------------------------------------------
# Main
# ----------------------------------------------------------------------------
if __name__ == "__main__":
    # Synthetic hyper-parameters consistent with the module:
    params = dict(phi_feature_dim=8, preselection_ap=16, num_users=5)
    feat = params['phi_feature_dim']           # F = 8
    P = params['preselection_ap']              # spatial H = W = 16
    input_dim = 4
    output_dim = 4 * feat                      # conv3 out channels = 4F = 32
    B = 2
    n1 = params['num_users'] - 1               # 4
    n2 = params['num_users'] - 1               # 4
    n3 = (params['num_users'] - 1) ** 2        # 16

    key = jax.random.PRNGKey(0)
    k1, k2, k3, k4, kx = jax.random.split(key, 5)

    # Deterministic parameter init (Conv2d 1x1 weights stored as (out, in)).
    w1 = jax.random.normal(k1, (4 * feat, input_dim), jnp.float32) / jnp.sqrt(input_dim)
    b1 = jax.random.normal(k2, (4 * feat, 1), jnp.float32) * 0.1
    w3 = jax.random.normal(k3, (output_dim, 4 * feat), jnp.float32) / jnp.sqrt(4 * feat)
    b3 = jax.random.normal(k4, (output_dim, 1), jnp.float32) * 0.1
    ex = jnp.ones((P, P), jnp.float32) - jnp.eye(P, dtype=jnp.float32)

    # Input: NCHW, spatial dims must equal preselection_ap.
    x = jax.random.normal(kx, (B, input_dim, P, P), jnp.float32)

    out = phi_forward(x, w1, b1, w3, b3, ex, feat, n1, n2, n3)
    out = jax.block_until_ready(out)

    ref = phi_reference(x, w1, b1, w3, b3, ex, feat, n1, n2, n3)
    ref = jax.block_until_ready(ref)

    assert out.shape == (B, 4 * feat, P, P), out.shape
    max_diff = float(jnp.max(jnp.abs(out - ref)))
    # Tolerance sized for bf16 MXU operands with f32 accumulation.
    tol = 2e-2 * (1.0 + float(jnp.max(jnp.abs(ref))))
    if max_diff > tol:
        raise AssertionError(f"mismatch vs reference: max|diff|={max_diff}, tol={tol}")

    print("KERNEL_OK")
</pallas_src>

<mosaic_0001>
module attributes {stable_mosaic.version = 11 : i64} {
  func.func @_phi_fused_kernel(%arg0: i32, %arg1: memref<1x4x256xf32, #tpu.memory_space<vmem>>, %arg2: memref<32x4xf32, #tpu.memory_space<vmem>>, %arg3: memref<32x1xf32, #tpu.memory_space<vmem>>, %arg4: memref<32x32xbf16, #tpu.memory_space<vmem>>, %arg5: memref<32x1xf32, #tpu.memory_space<vmem>>, %arg6: memref<256x256xbf16, #tpu.memory_space<vmem>>, %arg7: memref<256x256xbf16, #tpu.memory_space<vmem>>, %arg8: memref<1x32x256xf32, #tpu.memory_space<vmem>>) attributes {dimension_semantics = [#tpu.dimension_semantics<parallel>], iteration_bounds = array<i64: 2>, scalar_prefetch = 0 : i64, scratch_operands = 0 : i64, tpu.core_type = #tpu.core_type<tc>, window_params = [{transform_indices = @transform_0, window_bounds = array<i64: 1, 4, 256>}, {pipeline_mode = #tpu.pipeline_mode<synchronous>, transform_indices = @transform_1, window_bounds = array<i64: 32, 4>}, {pipeline_mode = #tpu.pipeline_mode<synchronous>, transform_indices = @transform_2, window_bounds = array<i64: 32, 1>}, {pipeline_mode = #tpu.pipeline_mode<synchronous>, transform_indices = @transform_3, window_bounds = array<i64: 32, 32>}, {pipeline_mode = #tpu.pipeline_mode<synchronous>, transform_indices = @transform_4, window_bounds = array<i64: 32, 1>}, {pipeline_mode = #tpu.pipeline_mode<synchronous>, transform_indices = @transform_5, window_bounds = array<i64: 256, 256>}, {pipeline_mode = #tpu.pipeline_mode<synchronous>, transform_indices = @transform_6, window_bounds = array<i64: 256, 256>}, {transform_indices = @transform_7, window_bounds = array<i64: 1, 32, 256>}]} {
    %c0 = arith.constant 0 : index
    %c0_0 = arith.constant 0 : index
    %c0_1 = arith.constant 0 : index
    %0 = vector.load %arg1[%c0, %c0_0, %c0_1] : memref<1x4x256xf32, #tpu.memory_space<vmem>>, vector<1x4x256xf32>
    %1 = vector.shape_cast %0 : vector<1x4x256xf32> to vector<4x256xf32>
    %c0_2 = arith.constant 0 : index
    %c0_3 = arith.constant 0 : index
    %2 = vector.load %arg2[%c0_2, %c0_3] : memref<32x4xf32, #tpu.memory_space<vmem>>, vector<32x4xf32>
    %c0_4 = arith.constant 0 : index
    %c0_5 = arith.constant 0 : index
    %3 = vector.load %arg3[%c0_4, %c0_5] : memref<32x1xf32, #tpu.memory_space<vmem>>, vector<32x1xf32>
    %4 = vector.shape_cast %3 : vector<32x1xf32> to vector<32x1xf32>
    %5 = vector.broadcast %4 : vector<32x1xf32> to vector<32x256xf32>
    %6 = vector.extract_strided_slice %2 {offsets = [0, 0], sizes = [32, 1], strides = [1, 1]} : vector<32x4xf32> to vector<32x1xf32>
    %7 = vector.extract_strided_slice %1 {offsets = [0, 0], sizes = [1, 256], strides = [1, 1]} : vector<4x256xf32> to vector<1x256xf32>
    %8 = vector.broadcast %6 : vector<32x1xf32> to vector<32x256xf32>
    %9 = vector.broadcast %7 : vector<1x256xf32> to vector<32x256xf32>
    %10 = arith.mulf %8, %9 : vector<32x256xf32>
    %11 = arith.addf %5, %10 : vector<32x256xf32>
    %12 = vector.extract_strided_slice %2 {offsets = [0, 1], sizes = [32, 1], strides = [1, 1]} : vector<32x4xf32> to vector<32x1xf32>
    %13 = vector.extract_strided_slice %1 {offsets = [1, 0], sizes = [1, 256], strides = [1, 1]} : vector<4x256xf32> to vector<1x256xf32>
    %14 = vector.broadcast %12 : vector<32x1xf32> to vector<32x256xf32>
    %15 = vector.broadcast %13 : vector<1x256xf32> to vector<32x256xf32>
    %16 = arith.mulf %14, %15 : vector<32x256xf32>
    %17 = arith.addf %11, %16 : vector<32x256xf32>
    %18 = vector.extract_strided_slice %2 {offsets = [0, 2], sizes = [32, 1], strides = [1, 1]} : vector<32x4xf32> to vector<32x1xf32>
    %19 = vector.extract_strided_slice %1 {offsets = [2, 0], sizes = [1, 256], strides = [1, 1]} : vector<4x256xf32> to vector<1x256xf32>
    %20 = vector.broadcast %18 : vector<32x1xf32> to vector<32x256xf32>
    %21 = vector.broadcast %19 : vector<1x256xf32> to vector<32x256xf32>
    %22 = arith.mulf %20, %21 : vector<32x256xf32>
    %23 = arith.addf %17, %22 : vector<32x256xf32>
    %24 = vector.extract_strided_slice %2 {offsets = [0, 3], sizes = [32, 1], strides = [1, 1]} : vector<32x4xf32> to vector<32x1xf32>
    %25 = vector.extract_strided_slice %1 {offsets = [3, 0], sizes = [1, 256], strides = [1, 1]} : vector<4x256xf32> to vector<1x256xf32>
    %26 = vector.broadcast %24 : vector<32x1xf32> to vector<32x256xf32>
    %27 = vector.broadcast %25 : vector<1x256xf32> to vector<32x256xf32>
    %28 = arith.mulf %26, %27 : vector<32x256xf32>
    %29 = arith.addf %23, %28 : vector<32x256xf32>
    %cst = arith.constant 0.000000e+00 : f32
    %30 = vector.broadcast %cst : f32 to vector<32x256xf32>
    %31 = arith.maximumf %29, %30 : vector<32x256xf32>
    %32 = vector.extract_strided_slice %31 {offsets = [8, 0], sizes = [16, 256], strides = [1, 1]} : vector<32x256xf32> to vector<16x256xf32>
    %33 = arith.truncf %32 : vector<16x256xf32> to vector<16x256xbf16>
    %c0_6 = arith.constant 0 : index
    %c0_7 = arith.constant 0 : index
    %34 = vector.load %arg6[%c0_6, %c0_7] : memref<256x256xbf16, #tpu.memory_space<vmem>>, vector<256x256xbf16>
    %cst_8 = arith.constant dense<0.000000e+00> : vector<16x256xf32>
    %35 = tpu.matmul %33, %34, %cst_8 {dimension_numbers = #tpu.dot_dimension_numbers<[1], [0], [0], [1], [0, 0, 1, 1], [], []>} : vector<16x256xbf16>, vector<256x256xbf16>, vector<16x256xf32> -> vector<16x256xf32>
    %36 = vector.extract_strided_slice %31 {offsets = [24, 0], sizes = [8, 256], strides = [1, 1]} : vector<32x256xf32> to vector<8x256xf32>
    %37 = vector.extract_strided_slice %35 {offsets = [8, 0], sizes = [8, 256], strides = [1, 1]} : vector<16x256xf32> to vector<8x256xf32>
    %38 = tpu.concatenate %36, %37 in 0 : vector<8x256xf32>, vector<8x256xf32> -> vector<16x256xf32>
    %39 = arith.truncf %38 : vector<16x256xf32> to vector<16x256xbf16>
    %c0_9 = arith.constant 0 : index
    %c0_10 = arith.constant 0 : index
    %40 = vector.load %arg7[%c0_9, %c0_10] : memref<256x256xbf16, #tpu.memory_space<vmem>>, vector<256x256xbf16>
    %cst_11 = arith.constant dense<0.000000e+00> : vector<16x256xf32>
    %41 = tpu.matmul %39, %40, %cst_11 {dimension_numbers = #tpu.dot_dimension_numbers<[1], [0], [0], [1], [0, 0, 1, 1], [], []>} : vector<16x256xbf16>, vector<256x256xbf16>, vector<16x256xf32> -> vector<16x256xf32>
    %42 = vector.extract_strided_slice %41 {offsets = [8, 0], sizes = [8, 256], strides = [1, 1]} : vector<16x256xf32> to vector<8x256xf32>
    %43 = vector.extract_strided_slice %31 {offsets = [0, 0], sizes = [8, 256], strides = [1, 1]} : vector<32x256xf32> to vector<8x256xf32>
    %44 = vector.extract_strided_slice %35 {offsets = [0, 0], sizes = [8, 256], strides = [1, 1]} : vector<16x256xf32> to vector<8x256xf32>
    %45 = vector.extract_strided_slice %41 {offsets = [0, 0], sizes = [8, 256], strides = [1, 1]} : vector<16x256xf32> to vector<8x256xf32>
    %46 = tpu.concatenate %43, %44, %42, %45 in 0 : vector<8x256xf32>, vector<8x256xf32>, vector<8x256xf32>, vector<8x256xf32> -> vector<32x256xf32>
    %47 = arith.truncf %46 : vector<32x256xf32> to vector<32x256xbf16>
    %c0_12 = arith.constant 0 : index
    %c0_13 = arith.constant 0 : index
    %48 = vector.load %arg4[%c0_12, %c0_13] : memref<32x32xbf16, #tpu.memory_space<vmem>>, vector<32x32xbf16>
    %cst_14 = arith.constant dense<0.000000e+00> : vector<32x256xf32>
    %49 = tpu.matmul %48, %47, %cst_14 {dimension_numbers = #tpu.dot_dimension_numbers<[1], [0], [0], [1], [0, 0, 1, 1], [], []>} : vector<32x32xbf16>, vector<32x256xbf16>, vector<32x256xf32> -> vector<32x256xf32>
    %c0_15 = arith.constant 0 : index
    %c0_16 = arith.constant 0 : index
    %50 = vector.load %arg5[%c0_15, %c0_16] : memref<32x1xf32, #tpu.memory_space<vmem>>, vector<32x1xf32>
    %51 = vector.broadcast %50 : vector<32x1xf32> to vector<32x256xf32>
    %52 = arith.addf %49, %51 : vector<32x256xf32>
    %cst_17 = arith.constant 0.000000e+00 : f32
    %53 = vector.broadcast %cst_17 : f32 to vector<32x256xf32>
    %54 = arith.maximumf %52, %53 : vector<32x256xf32>
    %55 = vector.extract_strided_slice %54 {offsets = [8, 0], sizes = [16, 256], strides = [1, 1]} : vector<32x256xf32> to vector<16x256xf32>
    %56 = arith.truncf %55 : vector<16x256xf32> to vector<16x256xbf16>
    %c0_18 = arith.constant 0 : index
    %c0_19 = arith.constant 0 : index
    %57 = vector.load %arg6[%c0_18, %c0_19] : memref<256x256xbf16, #tpu.memory_space<vmem>>, vector<256x256xbf16>
    %cst_20 = arith.constant dense<0.000000e+00> : vector<16x256xf32>
    %58 = tpu.matmul %56, %57, %cst_20 {dimension_numbers = #tpu.dot_dimension_numbers<[1], [0], [0], [1], [0, 0, 1, 1], [], []>} : vector<16x256xbf16>, vector<256x256xbf16>, vector<16x256xf32> -> vector<16x256xf32>
    %59 = vector.extract_strided_slice %54 {offsets = [24, 0], sizes = [8, 256], strides = [1, 1]} : vector<32x256xf32> to vector<8x256xf32>
    %60 = vector.extract_strided_slice %58 {offsets = [8, 0], sizes = [8, 256], strides = [1, 1]} : vector<16x256xf32> to vector<8x256xf32>
    %61 = tpu.concatenate %59, %60 in 0 : vector<8x256xf32>, vector<8x256xf32> -> vector<16x256xf32>
    %62 = arith.truncf %61 : vector<16x256xf32> to vector<16x256xbf16>
    %c0_21 = arith.constant 0 : index
    %c0_22 = arith.constant 0 : index
    %63 = vector.load %arg7[%c0_21, %c0_22] : memref<256x256xbf16, #tpu.memory_space<vmem>>, vector<256x256xbf16>
    %cst_23 = arith.constant dense<0.000000e+00> : vector<16x256xf32>
    %64 = tpu.matmul %62, %63, %cst_23 {dimension_numbers = #tpu.dot_dimension_numbers<[1], [0], [0], [1], [0, 0, 1, 1], [], []>} : vector<16x256xbf16>, vector<256x256xbf16>, vector<16x256xf32> -> vector<16x256xf32>
    %65 = vector.extract_strided_slice %64 {offsets = [8, 0], sizes = [8, 256], strides = [1, 1]} : vector<16x256xf32> to vector<8x256xf32>
    %66 = vector.extract_strided_slice %54 {offsets = [0, 0], sizes = [8, 256], strides = [1, 1]} : vector<32x256xf32> to vector<8x256xf32>
    %67 = vector.extract_strided_slice %58 {offsets = [0, 0], sizes = [8, 256], strides = [1, 1]} : vector<16x256xf32> to vector<8x256xf32>
    %68 = vector.extract_strided_slice %64 {offsets = [0, 0], sizes = [8, 256], strides = [1, 1]} : vector<16x256xf32> to vector<8x256xf32>
    %c0_24 = arith.constant 0 : index
    %c0_25 = arith.constant 0 : index
    %c0_26 = arith.constant 0 : index
    %69 = vector.load %arg8[%c0_24, %c0_25, %c0_26] : memref<1x32x256xf32, #tpu.memory_space<vmem>>, vector<1x8x256xf32>
    %70 = vector.shape_cast %69 : vector<1x8x256xf32> to vector<8x256xf32>
    %71 = vector.shape_cast %66 : vector<8x256xf32> to vector<1x8x256xf32>
    tpu.vector_store %arg8[%c0_24, %c0_25, %c0_26], %71 {strides = array<i32>} : memref<1x32x256xf32, #tpu.memory_space<vmem>>, vector<1x8x256xf32>,
    %c0_27 = arith.constant 0 : index
    %c8 = arith.constant 8 : index
    %c0_28 = arith.constant 0 : index
    %72 = vector.load %arg8[%c0_27, %c8, %c0_28] : memref<1x32x256xf32, #tpu.memory_space<vmem>>, vector<1x8x256xf32>
    %73 = vector.shape_cast %72 : vector<1x8x256xf32> to vector<8x256xf32>
    %74 = vector.shape_cast %67 : vector<8x256xf32> to vector<1x8x256xf32>
    tpu.vector_store %arg8[%c0_27, %c8, %c0_28], %74 {strides = array<i32>} : memref<1x32x256xf32, #tpu.memory_space<vmem>>, vector<1x8x256xf32>,
    %c0_29 = arith.constant 0 : index
    %c16 = arith.constant 16 : index
    %c0_30 = arith.constant 0 : index
    %75 = vector.load %arg8[%c0_29, %c16, %c0_30] : memref<1x32x256xf32, #tpu.memory_space<vmem>>, vector<1x8x256xf32>
    %76 = vector.shape_cast %75 : vector<1x8x256xf32> to vector<8x256xf32>
    %77 = vector.shape_cast %65 : vector<8x256xf32> to vector<1x8x256xf32>
    tpu.vector_store %arg8[%c0_29, %c16, %c0_30], %77 {strides = array<i32>} : memref<1x32x256xf32, #tpu.memory_space<vmem>>, vector<1x8x256xf32>,
    %c0_31 = arith.constant 0 : index
    %c24 = arith.constant 24 : index
    %c0_32 = arith.constant 0 : index
    %78 = vector.load %arg8[%c0_31, %c24, %c0_32] : memref<1x32x256xf32, #tpu.memory_space<vmem>>, vector<1x8x256xf32>
    %79 = vector.shape_cast %78 : vector<1x8x256xf32> to vector<8x256xf32>
    %80 = vector.shape_cast %68 : vector<8x256xf32> to vector<1x8x256xf32>
    tpu.vector_store %arg8[%c0_31, %c24, %c0_32], %80 {strides = array<i32>} : memref<1x32x256xf32, #tpu.memory_space<vmem>>, vector<1x8x256xf32>,
    return
  }
  func.func @transform_0(%arg0: i32) -> (i32, i32, i32) {
    %c0_i32 = arith.constant 0 : i32
    %c0_i32_0 = arith.constant 0 : i32
    %c0_i32_1 = arith.constant 0 : i32
    return %arg0, %c0_i32, %c0_i32_0 : i32, i32, i32
  }
  func.func @transform_1(%arg0: i32) -> (i32, i32) {
    %c0_i32 = arith.constant 0 : i32
    %c0_i32_0 = arith.constant 0 : i32
    %c0_i32_1 = arith.constant 0 : i32
    return %c0_i32, %c0_i32_0 : i32, i32
  }
  func.func @transform_2(%arg0: i32) -> (i32, i32) {
    %c0_i32 = arith.constant 0 : i32
    %c0_i32_0 = arith.constant 0 : i32
    %c0_i32_1 = arith.constant 0 : i32
    return %c0_i32, %c0_i32_0 : i32, i32
  }
  func.func @transform_3(%arg0: i32) -> (i32, i32) {
    %c0_i32 = arith.constant 0 : i32
    %c0_i32_0 = arith.constant 0 : i32
    %c0_i32_1 = arith.constant 0 : i32
    return %c0_i32, %c0_i32_0 : i32, i32
  }
  func.func @transform_4(%arg0: i32) -> (i32, i32) {
    %c0_i32 = arith.constant 0 : i32
    %c0_i32_0 = arith.constant 0 : i32
    %c0_i32_1 = arith.constant 0 : i32
    return %c0_i32, %c0_i32_0 : i32, i32
  }
  func.func @transform_5(%arg0: i32) -> (i32, i32) {
    %c0_i32 = arith.constant 0 : i32
    %c0_i32_0 = arith.constant 0 : i32
    %c0_i32_1 = arith.constant 0 : i32
    return %c0_i32, %c0_i32_0 : i32, i32
  }
  func.func @transform_6(%arg0: i32) -> (i32, i32) {
    %c0_i32 = arith.constant 0 : i32
    %c0_i32_0 = arith.constant 0 : i32
    %c0_i32_1 = arith.constant 0 : i32
    return %c0_i32, %c0_i32_0 : i32, i32
  }
  func.func @transform_7(%arg0: i32) -> (i32, i32, i32) {
    %c0_i32 = arith.constant 0 : i32
    %c0_i32_0 = arith.constant 0 : i32
    %c0_i32_1 = arith.constant 0 : i32
    return %arg0, %c0_i32, %c0_i32_0 : i32, i32, i32
  }
}

</mosaic_0001>

<bundles_post_ra>
// kernel: tpu_custom_call.1
= control target key start
LH: loop header
LB: loop body
LE: loop exit
PB: predicated region body
PF: predicated region fallthrough
CT: control target
= control target key end

     0   :  { %12 = vsyncpa [#allocation3], 0  ;;  %s2299_s0 = inlined_call_operand.vmem [shape: f32[2,4,256], index: 0, kind: input, shape index: {}]   ;;  %s2300_s1 = inlined_call_operand.vmem [shape: f32[32,4], index: 1, kind: input, shape index: {}]   ;;  %s2301_s2 = inlined_call_operand.vmem [shape: f32[32,1], index: 2, kind: input, shape index: {}]   ;;  %s2302_s3 = inlined_call_operand.vmem [shape: bf16[32,32], index: 3, kind: input, shape index: {}]   ;;  %s2303_s4 = inlined_call_operand.vmem [shape: f32[32,1], index: 4, kind: input, shape index: {}]   ;;  %s2304_s5 = inlined_call_operand.hbm [shape: bf16[256,256], index: 5, kind: input, shape index: {}]   ;;  %s2305_s6 = inlined_call_operand.hbm [shape: bf16[256,256], index: 6, kind: input, shape index: {}]   ;;  %s2306_s7 = inlined_call_operand.hbm [shape: f32[2,32,256], index: 7, kind: output, shape index: {}]  }
   0x1   :  { %13 = vsyncpa [#allocation6], 0 }
   0x2   :  { %14 = vsyncpa [#allocation4], 0 }
   0x3   :  { %16 = vsyncpa [#allocation4 + $0x1], 0  ;;  %s1774_s24 = smov 0   ;;  %s1776_s25 = smov 0  }
   0x4   :  { %s1778_s26 = smov 0   ;;  %s1780_s27 = smov 0  }
   0x5 LB: > { %s1795_s28 = sadd.s32 4294967295, %s1721_s27   ;;  %s1330_s29 = sadd.s32 4294967294, %s1721_s27   ;;  %s1721_s27 = sphi %s1780_s27, %s2425_s27   ;;  %s1717_s26 = sphi %s1778_s26, %s2424_s26   ;;  %s1713_s25 = sphi %s1776_s25, %s2423_s25   ;;  %s1709_s24 = sphi %s1774_s24, %s2422_s24  }
   0x6   : > { %s1799_s30 = sadd.s32 1, %s1721_s27   ;;  %s181_s8 = sadd.s32 1, %s1717_s26 }
   0x7   : > { %s178_s9 = ssub.s32 %s1721_s27, %s1799_s30  ;;  %p191_p0 = scmp.ne.s32.totalorder %s1717_s26, %s1713_s25 }
   0x8   : > { %p179_p1 = scmp.eq.s32.totalorder %s178_s9, 0  ;;  %p192_p2 = scmp.eq.s32.totalorder %s1795_s28, 1 }
   0x9   : > { %p197_p3 = scmp.ne.s32.totalorder %s1713_s25, %s1709_s24  ;;  %p198_p4 = scmp.eq.s32.totalorder %s1330_s29, 1 }
   0xa   : > { %s1810_s10 = scalar_select %p179_p1, %s1717_s26, %s181_s8  }
   0xb   : > { %p1812_p5 = por %p192_p2, %p191_p0  ;;  %p1816_p6 = por %p198_p4, %p197_p3 }
   0xc   : > { %p1331_p7 = scmp.ge.s32.totalorder %s1721_s27, 1  ;;  %p205_p8 = scmp.lt.s32.totalorder %s1721_s27, 3 }
   0xd   : > { %s2345_s12 = scalar_select %p1816_p6, 1, 0 }
   0xe   : > { %p2307_p9 = scmp.eq.s32.totalorder %s1795_s28, 0  ;;  %p1823_p10 = pnand %p1331_p7, %p205_p8 }
   0xf   : > { %s1723_s14 = smov [#allocation2]   ;;  %s1724_s17 = smov [#allocation5]  }
  0x10   : > { %s229_s15 = sshll.u32 %s1723_s14, 4  ;;  %p1426_p11 = pneg %p1823_p10  ;;  %s230_s15 = int_to_ptr.vmem [resolvable:$true] %s229_s15 }
  0x11   : > { %s242_s18 = sshll.u32 %s1724_s17, 4  ;;  %s1612_s19 = scalar_lea.vmem %s230_s15, 4096  ;;  %s243_s18 = int_to_ptr.vmem [resolvable:$true] %s242_s18 }
  0x12   : > { %p1831_p12 = pnand %p2307_p9, %p1426_p11  ;;  %p1613_p0 = scmp.ne.s32.totalorder %s230_s15, %s1612_s19 }
  0x13   : > { %p1620_p3 = scmp.lt.s32.totalorder %s230_s15, %s230_s15  ;;  %p1621_p4 = scmp.lt.s32.totalorder %s1612_s19, %s1612_s19 }
  0x14   : > { %p1603_p13 = pneg %p1831_p12 }
  0x15   : > { %p1622_p7 = por %p1621_p4, %p1620_p3 }
  0x16   : > { %p1615_p1 = pnand %p1613_p0, %p1603_p13 }
  0x18   : > { %p1616_p2 = pneg %p1615_p1 }
  0x1a   : > { %p1623_p8 = pnand %p1622_p7, %p1616_p2 }
  0x1c   : > { %1626 = shalt.err (!%p1623_p8)
}
  0x1d   : > { %s1725_s20 = smov 128   ;;  %s1726_s21 = smov 8  }
  0x1e   : > { %1429 = dma.hbm_to_vmem [thread:$0]  (!%p1831_p12), %s2304_s5, 4096, %s230_s15, [#allocation3], %s1725_s20, %s1725_s20, %s1726_s21  }
  0x1f   : > { %s1638_s29 = scalar_lea.vmem %s243_s18, 4096  ;;  %p1646_p9 = scmp.lt.s32.totalorder %s243_s18, %s243_s18 }
  0x20   : > { %p1639_p11 = scmp.ne.s32.totalorder %s243_s18, %s1638_s29  ;;  %p1647_p6 = scmp.lt.s32.totalorder %s1638_s29, %s1638_s29 }
  0x22   : > { %p1641_p0 = pnand %p1639_p11, %p1603_p13  ;;  %p1648_p3 = por %p1647_p6, %p1646_p9 }
  0x24   : > { %p1642_p1 = pneg %p1641_p0 }
  0x26   : > { %p1649_p2 = pnand %p1648_p3, %p1642_p1 }
  0x28   : > { %1652 = shalt.err (!%p1649_p2)
}
  0x29   : > { %1432 = dma.hbm_to_vmem [thread:$0]  (!%p1831_p12), %s2305_s6, 4096, %s243_s18, [#allocation6], %s1725_s20, %s1725_s20, %s1726_s21  }
  0x2a   : > { %266 = sbr.rel (%p1823_p10) target bundleno = 1247 (0x4df), region = 48 }
  0x2f   : > { %p2348_p4 = scmp.eq.s32.totalorder %s1795_s28, 0 }
  0x31   : > { %1696 = dma.done.wait (%p2348_p4), [#allocation3], 4096   ;;  %p2349_p13 = pmov %p2348_p4 }
  0x32   : > { %p2350_p7 = pmov %p2348_p4 }
  0x33   : > { %1698 = vsyncadd (%p2349_p13), [#allocation3], 4294963200 }
  0x34   : > { %1700 = dma.done.wait (%p2350_p7), [#allocation6], 4096   ;;  %p2351_p6 = pmov %p2348_p4 }
  0x35   : > { %v2308_v0 = vmov 0   ;;  %v314_v1 = vld [vmem:[%s2301_s2 + $0x8] sm:$0xff]  ;;  %v315_v3 = vld [vmem:[%s2301_s2 + $0x10] sm:$0xff]  ;;  %v1728_v10 = vmov 1   ;;  %v1729_v13 = vmov 2   ;;  %v1730_v16 = vmov 3  }
  0x36   : > { %1702 = vsyncadd (%p2351_p6), [#allocation6], 4294963200  ;;  %1485 = vset.pattern.permute.xlu1 %v2308_v0  ;;  %1484 = vset.pattern.permute.xlu0 %v2308_v0  ;;  %v310_v2 = vld [vmem:[%s2300_s1 + $0x8] sm:$0xff]  ;;  %v311_v4 = vld [vmem:[%s2300_s1 + $0x10] sm:$0xff]  ;;  %p302_p9 = scmp.lt.s32.totalorder %s1795_s28, 1  ;;  %vm1066_vm0 = vcmask 261120  }
  0x37   : > { %324 = vperm.xlu1 %1485, %v314_v1   ;;  %344 = vperm.xlu0 %1484, %v310_v2   ;;  %v1877_v5 = vld [vmem:[#allocation2 + $0x74] ss:$8 sps:$4 sm:$0xff]   ;;  %v1879_v6 = vld [vmem:[#allocation2 + $0x70] ss:$8 sps:$4 sm:$0xff]   ;;  %v1881_v7 = vld [vmem:[#allocation2 + $0x64] ss:$8 sps:$4 sm:$0xff]  }
  0x38   : > { %744 = vmatprep.subr.bf16.mxu0 %v1877_v5  ;;  %v1886_v8 = vld [vmem:[#allocation2 + $0x60] ss:$8 sps:$4 sm:$0xff]   ;;  %v1888_v9 = vld [vmem:[#allocation2 + $0x54] ss:$8 sps:$4 sm:$0xff]   ;;  %v1894_v11 = vld [vmem:[#allocation2 + $0x50] ss:$8 sps:$4 sm:$0xff]  }
  0x39   : > { %745 = vmatpush1.bf16.msra.mxu0 %v1879_v6  ;;  %v1896_v12 = vld [vmem:[#allocation2 + $0x44] ss:$8 sps:$4 sm:$0xff]   ;;  %v1901_v14 = vld [vmem:[#allocation2 + $0x40] ss:$8 sps:$4 sm:$0xff]   ;;  %v1904_v15 = vld [vmem:[#allocation2 + $0x34] ss:$8 sps:$4 sm:$0xff]  }
  0x3a   : > { %746 = vmatprep.subr.bf16.mxu0 %v1881_v7  ;;  %v1909_v17 = vld [vmem:[#allocation2 + $0x30] ss:$8 sps:$4 sm:$0xff]   ;;  %v1912_v18 = vld [vmem:[#allocation2 + $0x24] ss:$8 sps:$4 sm:$0xff]   ;;  %v1914_v19 = vld [vmem:[#allocation2 + $0x20] ss:$8 sps:$4 sm:$0xff]  }
  0x3b   : > { %329 = vperm.xlu1 %1485, %v315_v3   ;;  %349 = vperm.xlu0 %1484, %v311_v4   ;;  %v1917_v20 = vld [vmem:[#allocation2 + $0x14] ss:$8 sps:$4 sm:$0xff]   ;;  %v1920_v21 = vld [vmem:[#allocation2 + $0x10] ss:$8 sps:$4 sm:$0xff]   ;;  %v1925_v22 = vld [vmem:[#allocation2 + $0x4] ss:$8 sps:$4 sm:$0xff]  }
  0x3c   : > { %v316_v23 = vld [vmem:[%s2301_s2 + $0x18] sm:$0xff]  ;;  %v1938_v27 = vld [vmem:[#allocation2] ss:$8 sps:$4 sm:$0xff]   ;;  %v1941_v28 = vld [vmem:[#allocation5 + $0x64] ss:$8 sps:$4 sm:$0xff]   ;;  %s303_s15 = scalar_select %p302_p9, %s1795_s28, 1 }
  0x3d   : > { %747 = vmatpush1.bf16.msra.mxu0 %v1886_v8  ;;  %v312_v24 = vld [vmem:[%s2300_s1 + $0x18] sm:$0xff]  ;;  %2354 = vst [vmem:[#allocation13_spill] sm:$0xff] %v1941_v28  ;;  %v1947_v30 = vld [vmem:[#allocation5 + $0x60] ss:$8 sps:$4 sm:$0xff]   ;;  %v1955_v33 = vld [vmem:[#allocation2 + $0xe4] ss:$8 sps:$4 sm:$0xff]  }
  0x3e   : > { %748 = vmatprep.subr.bf16.mxu0 %v1888_v9  ;;  %v1933_v25 = vld [vmem:[#allocation5 + $0x74] ss:$8 sps:$4 sm:$0xff]   ;;  %v1935_v26 = vld [vmem:[#allocation5 + $0x70] ss:$8 sps:$4 sm:$0xff]   ;;  %2355 = vst [vmem:[#allocation14_spill] sm:$0xff] %v1947_v30  ;;  %v313_v34 = vld [vmem:[%s2301_s2] sm:$0xff] }
  0x3f   : > { %1487 = vset.pattern.permute.xlu1 %v1728_v10  ;;  %1486 = vset.pattern.permute.xlu0 %v1728_v10  ;;  %2352 = vst [vmem:[#allocation11_spill] sm:$0xff] %v1933_v25  ;;  %2353 = vst [vmem:[#allocation12_spill] sm:$0xff] %v1935_v26  ;;  %v1944_v29 = vld [vmem:[#allocation2 + $0xf4] ss:$8 sps:$4 sm:$0xff]   ;;  %v1953_v32 = vld [vmem:[#allocation2 + $0xf0] ss:$8 sps:$4 sm:$0xff]  }
  0x40   : > { %401 = vperm.xlu1 %1487, %v311_v4   ;;  %397 = vperm.xlu0 %1486, %v310_v2   ;;  %v1951_v31 = vld [vmem:[#allocation5 + $0x54] ss:$8 sps:$4 sm:$0xff]   ;;  %v1964_v35 = vld [vmem:[#allocation5 + $0x50] ss:$8 sps:$4 sm:$0xff]   ;;  %v1966_v36 = vld [vmem:[#allocation5 + $0x44] ss:$8 sps:$4 sm:$0xff]  }
  0x41   : > { %749 = vmatpush1.bf16.msra.mxu0 %v1894_v11  ;;  %981 = vmatprep.subr.bf16.mxu1 %v1933_v25  ;;  %2356 = vst [vmem:[#allocation15_spill] sm:$0xff] %v1951_v31  ;;  %2357 = vst [vmem:[#allocation16_spill] sm:$0xff] %v1964_v35  ;;  %v1968_v37 = vld [vmem:[#allocation2 + $0xe0] ss:$8 sps:$4 sm:$0xff]   ;;  %v1971_v38 = vld [vmem:[#allocation2 + $0xd4] ss:$8 sps:$4 sm:$0xff]  }
  0x42   : > { %750 = vmatprep.subr.bf16.mxu0 %v1896_v12  ;;  %982 = vmatpush1.bf16.msra.mxu1 %v1935_v26  ;;  %2358 = vst [vmem:[#allocation17_spill] sm:$0xff] %v1966_v36  ;;  %v309_v39 = vld [vmem:[%s2300_s1] sm:$0xff]  ;;  %v1984_v41 = vld [vmem:[#allocation5 + $0x34] ss:$8 sps:$4 sm:$0xff]   ;;  %v1987_v42 = vld [vmem:[#allocation2 + $0xd0] ss:$8 sps:$4 sm:$0xff]  }
  0x43   : > { %983 = vmatprep.subr.bf16.mxu1 %v1941_v28  ;;  %v1980_v40 = vld [vmem:[#allocation5 + $0x40] ss:$8 sps:$4 sm:$0xff]   ;;  %2360 = vst [vmem:[#allocation19_spill] sm:$0xff] %v1984_v41  ;;  %v1991_v43 = vld [vmem:[#allocation2 + $0xc4] ss:$8 sps:$4 sm:$0xff]   ;;  %s1414_s16 = sshll.u32 %s303_s15, 3 }
  0x44   : > { %1488 = vset.pattern.permute.xlu1 %v1729_v13  ;;  %1489 = vset.pattern.permute.xlu0 %v1729_v13  ;;  %2359 = vst [vmem:[#allocation18_spill] sm:$0xff] %v1980_v40  ;;  %v1995_v44 = vld [vmem:[#allocation5 + $0x30] ss:$8 sps:$4 sm:$0xff]   ;;  %v1998_v45 = vld [vmem:[#allocation5 + $0x24] ss:$8 sps:$4 sm:$0xff]   ;;  %s306_s19 = scalar_lea.vmem %s2299_s0, %s1414_s16  ;;  %s299_s18 = sand.u32 1, %s1713_s25  }
  0x45   : > { %447 = vperm.xlu1 %1488, %v310_v2   ;;  %451 = vperm.xlu0 %1489, %v311_v4   ;;  %2361 = vst [vmem:[#allocation20_spill] sm:$0xff] %v1995_v44  ;;  %2362 = vst [vmem:[#allocation21_spill] sm:$0xff] %v1998_v45  ;;  %v2001_v46 = vld [vmem:[#allocation2 + $0xc0] ss:$8 sps:$4 sm:$0xff]   ;;  %v2004_v47 = vld [vmem:[#allocation2 + $0xb4] ss:$8 sps:$4 sm:$0xff]  }
  0x46   : > { %751 = vmatpush1.bf16.msra.mxu0 %v1901_v14  ;;  %984 = vmatpush1.bf16.msra.mxu1 %v1947_v30  ;;  %v2008_v48 = vld [vmem:[#allocation5 + $0x20] ss:$8 sps:$4 sm:$0xff]   ;;  %v2011_v49 = vld [vmem:[#allocation5 + $0x14] ss:$8 sps:$4 sm:$0xff]   ;;  %v2015_v50 = vld [vmem:[#allocation2 + $0xb0] ss:$8 sps:$4 sm:$0xff]  }
  0x47   : > { %752 = vmatprep.subr.bf16.mxu0 %v1904_v15  ;;  %985 = vmatprep.subr.bf16.mxu1 %v1951_v31  ;;  %2363 = vst [vmem:[#allocation22_spill] sm:$0xff] %v2008_v48  ;;  %2364 = vst [vmem:[#allocation23_spill] sm:$0xff] %v2011_v49  ;;  %v2018_v51 = vld [vmem:[#allocation2 + $0xa4] ss:$8 sps:$4 sm:$0xff]   ;;  %v2022_v52 = vld [vmem:[#allocation5 + $0x10] ss:$8 sps:$4 sm:$0xff]  }
  0x48   : > { %2365 = vst [vmem:[#allocation24_spill] sm:$0xff] %v2018_v51  ;;  %2366 = vst [vmem:[#allocation25_spill] sm:$0xff] %v2022_v52  ;;  %v2025_v53 = vld [vmem:[#allocation5 + $0x4] ss:$8 sps:$4 sm:$0xff]   ;;  %v2028_v54 = vld [vmem:[#allocation2 + $0xa0] ss:$8 sps:$4 sm:$0xff]  }
  0x49   : > { %1490 = vset.pattern.permute.xlu1 %v1730_v16  ;;  %1491 = vset.pattern.permute.xlu0 %v2308_v0  ;;  %2367 = vst [vmem:[#allocation26_spill] sm:$0xff] %v2025_v53  ;;  %2368 = vst [vmem:[#allocation27_spill] sm:$0xff] %v2028_v54  ;;  %v2031_v55 = vld [vmem:[#allocation2 + $0x94] ss:$8 sps:$4 sm:$0xff]   ;;  %v2034_v56 = vld [vmem:[#allocation5] ss:$8 sps:$4 sm:$0xff]  }
  0x4a   : > { %497 = vperm.xlu1 %1490, %v310_v2   ;;  %753 = vmatpush1.bf16.msra.mxu0 %v1909_v17  ;;  %2369 = vst [vmem:[#allocation28_spill] sm:$0xff] %v2031_v55  ;;  %2370 = vst [vmem:[#allocation29_spill] sm:$0xff] %v2034_v56  ;;  %v2037_v57 = vld [vmem:[#allocation5 + $0xf4] ss:$8 sps:$4 sm:$0xff]   ;;  %v2041_v58 = vld [vmem:[#allocation2 + $0x90] ss:$8 sps:$4 sm:$0xff]  }
  0x4b   : > { %754 = vmatprep.subr.bf16.mxu0 %v1912_v18  ;;  %354 = vperm.xlu0 %1491, %v312_v24   ;;  %2371 = vst [vmem:[#allocation30_spill] sm:$0xff] %v2037_v57  ;;  %2372 = vst [vmem:[#allocation31_spill] sm:$0xff] %v2041_v58  ;;  %v2044_v59 = vld [vmem:[#allocation2 + $0x84] ss:$8 sps:$4 sm:$0xff]   ;;  %v2047_v60 = vld [vmem:[#allocation5 + $0xf0] ss:$8 sps:$4 sm:$0xff]  }
  0x4c   : > { %986 = vmatpush1.bf16.msra.mxu1 %v1964_v35  ;;  %2373 = vst [vmem:[#allocation32_spill] sm:$0xff] %v2044_v59  ;;  %2374 = vst [vmem:[#allocation33_spill] sm:$0xff] %v2047_v60  ;;  %v2050_v61 = vld [vmem:[#allocation5 + $0xe4] ss:$8 sps:$4 sm:$0xff]   ;;  %v2053_v62 = vld [vmem:[#allocation2 + $0x80] ss:$8 sps:$4 sm:$0xff]  }
  0x4d   : > { %987 = vmatprep.subr.bf16.mxu1 %v1966_v36  ;;  %2375 = vst [vmem:[#allocation34_spill] sm:$0xff] %v2050_v61  ;;  %2376 = vst [vmem:[#allocation35_spill] sm:$0xff] %v2053_v62  ;;  %v2057_v63 = vld [vmem:[#allocation5 + $0xe0] ss:$8 sps:$4 sm:$0xff]   ;;  %v2060_v1 = vld [vmem:[#allocation5 + $0xd4] ss:$8 sps:$4 sm:$0xff]  }
  0x4e   : > { %501 = vperm.xlu1 %1490, %v311_v4   ;;  %755 = vmatpush1.bf16.msra.mxu0 %v1914_v19  ;;  %2377 = vst [vmem:[#allocation36_spill] sm:$0xff] %v2057_v63  ;;  %2378 = vst [vmem:[#allocation37_spill] sm:$0xff] %v2060_v1  ;;  %v2064_v2 = vld [vmem:[#allocation5 + $0xd0] ss:$8 sps:$4 sm:$0xff]   ;;  %v2067_v3 = vld [vmem:[#allocation5 + $0xc4] ss:$8 sps:$4 sm:$0xff]  }
  0x4f   : > { %756 = vmatprep.subr.bf16.mxu0 %v1917_v20  ;;  %1494 = vset.pattern.permute.xlu0 %v1729_v13  ;;  %2379 = vst [vmem:[#allocation38_spill] sm:$0xff] %v2064_v2  ;;  %2380 = vst [vmem:[#allocation39_spill] sm:$0xff] %v2067_v3  ;;  %v2070_v4 = vld [vmem:[#allocation5 + $0xc0] ss:$8 sps:$4 sm:$0xff]   ;;  %s1415_s22 = sshll.u32 %s1795_s28, 10  ;;  %s2259_s9 = scalar_lea.sflag [#allocation4], %s299_s18 }
  0x50   : > { %455 = vperm.xlu0 %1494, %v312_v24   ;;  %988 = vmatpush1.bf16.msra.mxu1 %v1980_v40  ;;  %2381 = vst [vmem:[#allocation40_spill] sm:$0xff] %v2070_v4  ;;  %s2253_s8 = scalar_lea.hbm %s2306_s7, %s1415_s22  ;;  %s1731_s14 = smov [#allocation7]  }
  0x51   : > { %989 = vmatprep.subr.bf16.mxu1 %v1984_v41  ;;  %s1657_s13 = sshll.u32 %s1731_s14, 4  ;;  %s1658_s13 = int_to_ptr.vmem [resolvable:$false] %s1657_s13 }
  0x52   : > { %1492 = vset.pattern.permute.xlu1 %v2308_v0  ;;  %757 = vmatpush1.bf16.msra.mxu0 %v1920_v21  ;;  %s1659_s15 = scalar_lea.vmem %s1658_s13, 2048 }
  0x53   : > { %334 = vperm.xlu1 %1492, %v316_v23   ;;  %758 = vmatprep.subr.bf16.mxu0 %v1925_v22  ;;  %v2082_v23 = vld [vmem:[#allocation5 + $0xa0] ss:$8 sps:$4 sm:$0xff]  }
  0x54   : > { %1497 = vset.pattern.permute.xlu0 %v2308_v0  ;;  %990 = vmatpush1.bf16.msra.mxu1 %v1995_v44  ;;  %2385 = vst [vmem:[#allocation44_spill] sm:$0xff] %v2082_v23 }
  0x55   : > { %319 = vperm.xlu0 %1497, %v313_v34   ;;  %991 = vmatprep.subr.bf16.mxu1 %v1998_v45 }
  0x56   : > { %759 = vmatpush1.bf16.msra.mxu0 %v1938_v27 }
  0x57   : > { %1493 = vset.pattern.permute.xlu1 %v1728_v10  ;;  %760 = vmatprep.subr.bf16.mxu0 %v1944_v29 }
  0x58   : > { %405 = vperm.xlu1 %1493, %v312_v24   ;;  %992 = vmatpush1.bf16.msra.mxu1 %v2008_v48 }
  0x59   : > { %1500 = vset.pattern.permute.xlu0 %v1730_v16  ;;  %993 = vmatprep.subr.bf16.mxu1 %v2011_v49 }
  0x5a   : > { %761 = vmatpush2.bf16.msra.mxu0 %v1953_v32  ;;  %493 = vperm.xlu0 %1500, %v309_v39  }
  0x5b   : > { %762 = vmatprep.subr.bf16.mxu0 %v1955_v33 }
  0x5c   : > { %1495 = vset.pattern.permute.xlu1 %v1730_v16  ;;  %994 = vmatpush1.bf16.msra.mxu1 %v2022_v52  ;;  %v2079_v16 = vld [vmem:[#allocation5 + $0xa4] ss:$8 sps:$4 sm:$0xff]  }
  0x5d   : > { %505 = vperm.xlu1 %1495, %v312_v24   ;;  %995 = vmatprep.subr.bf16.mxu1 %v2025_v53  ;;  %2384 = vst [vmem:[#allocation43_spill] sm:$0xff] %v2079_v16  ;;  %v358_v24 = vlaneseq }
  0x5e   : > { %763 = vmatpush2.bf16.msra.mxu0 %v1968_v37  ;;  %1502 = vset.pattern.permute.xlu0 %v2308_v0 }
  0x5f   : > { %764 = vmatprep.subr.bf16.mxu0 %v1971_v38  ;;  %v359_v34 = vshrl.u32 %v358_v24, 7 }
  0x60   : > { %996 = vmatpush1.bf16.msra.mxu1 %v2034_v56 }
  0x61   : > { %1496 = vset.pattern.permute.xlu1 %v2308_v0  ;;  %997 = vmatprep.subr.bf16.mxu1 %v2037_v57  ;;  %v510_v24 = vsub.s32 3, %v359_v34  ;;  %v514_v53 = vsub.s32 7, %v359_v34 }
  0x62   : > { %339 = vperm.xlu1 %1496, %v309_v39   ;;  %765 = vmatpush2.bf16.msra.mxu0 %v1987_v42 }
  0x63   : > { %766 = vmatprep.subr.bf16.mxu0 %v1991_v43 }
  0x64   : > { %998 = vmatpush2.bf16.msra.mxu1 %v2047_v60  ;;  %v464_v60 = vsub.s32 6, %v359_v34 }
  0x65   : > { %999 = vmatprep.subr.bf16.mxu1 %v2050_v61  ;;  %v460_v61 = vsub.s32 2, %v359_v34 }
  0x66   : > { %1498 = vset.pattern.permute.xlu1 %v1728_v10  ;;  %767 = vmatpush2.bf16.msra.mxu0 %v2001_v46  ;;  %v2073_v10 = vld [vmem:[#allocation5 + $0xb4] ss:$8 sps:$4 sm:$0xff]  }
  0x67   : > { %393 = vperm.xlu1 %1498, %v309_v39   ;;  %768 = vmatprep.subr.bf16.mxu0 %v2004_v47  ;;  %2382 = vst [vmem:[#allocation41_spill] sm:$0xff] %v2073_v10 }
  0x68   : > { %1000 = vmatpush2.bf16.msra.mxu1 %v2057_v63 }
  0x69   : > { %1001 = vmatprep.subr.bf16.mxu1 %v2060_v1  ;;  %v410_v1 = vsub.s32 1, %v359_v34 }
  0x6a   : > { %769 = vmatpush2.bf16.msra.mxu0 %v2015_v50 }
  0x6b   : > { %1499 = vset.pattern.permute.xlu1 %v1729_v13  ;;  %770 = vmatprep.subr.bf16.mxu0 %v2018_v51  ;;  %v2076_v13 = vld [vmem:[#allocation5 + $0xb0] ss:$8 sps:$4 sm:$0xff]  }
  0x6c   : > { %443 = vperm.xlu1 %1499, %v309_v39   ;;  %1002 = vmatpush2.bf16.msra.mxu1 %v2064_v2  ;;  %2383 = vst [vmem:[#allocation42_spill] sm:$0xff] %v2076_v13 }
  0x6d   : > { %1003 = vmatprep.subr.bf16.mxu1 %v2067_v3 }
  0x6e   : > { %771 = vmatpush2.bf16.msra.mxu0 %v2028_v54 }
  0x6f   : > { %772 = vmatprep.subr.bf16.mxu0 %v2031_v55 }
  0x70   : > { %1501 = vset.pattern.permute.xlu1 %v2308_v0  ;;  %1004 = vmatpush2.bf16.msra.mxu1 %v2070_v4  ;;  %v364_v4 = vsub.s32 4, %v359_v34 }
  0x71   : > { %1005 = vmatprep.subr.bf16.mxu1 %v2073_v10  ;;  %v360_v10 = vsub.s32 0, %v359_v34 }
  0x72   : > { %773 = vmatpush2.bf16.msra.mxu0 %v2041_v58 }
  0x73   : > { %774 = vmatprep.subr.bf16.mxu0 %v2044_v59 }
  0x74   : > { %1006 = vmatpush2.bf16.msra.mxu1 %v2076_v13  ;;  %v308_v13 = vld [vmem:[%s306_s19] sm:$0xff]  ;;  %s1338_s19 = sshll.u32 %s299_s18, 6 }
  0x75   : > { %1007 = vmatprep.subr.bf16.mxu1 %v2079_v16  ;;  %v414_v16 = vsub.s32 5, %v359_v34  ;;  %v361_v63 = vrot.slane %v308_v13, %v360_v10  ;;  %v411_v57 = vrot.slane %v308_v13, %v410_v1  ;;  %v461_v44 = vrot.slane %v308_v13, %v460_v61  ;;  %s2238_s20 = scalar_lea.vmem [#allocation7], %s1338_s19 }
  0x76   : > { %775 = vmatpush2.bf16.msra.mxu0 %v2053_v62  ;;  %v465_v41 = vrot.slane %v308_v13, %v464_v60  ;;  %v511_v35 = vrot.slane %v308_v13, %v510_v24  ;;  %s1246_s21 = sshll.u32 %s2238_s20, 4  ;;  %s2248_s21 = int_to_ptr.vmem [resolvable:$true] %s1246_s21 }
  0x77   : > { %v415_v56 = vrot.slane %v308_v13, %v414_v16  ;;  %v2091_v49 = vrot.slane %v361_v63, %v360_v10  ;;  %v2095_v40 = vrot.slane %v411_v57, %v410_v1  ;;  %v2101_v34 = vrot.slane %v461_v44, %v460_v61  ;;  %s1653_s28 = scalar_lea.vmem %s2248_s21, 1024  ;;  %p1660_p11 = scmp.lt.s32.totalorder %s2248_s21, %s1658_s13 }
  0x78   : > { %1008 = vmatpush2.bf16.msra.mxu1 %v2082_v23  ;;  %v365_v23 = vrot.slane %v308_v13, %v364_v4  ;;  %v515_v4 = vrot.slane %v308_v13, %v514_v53  ;;  %v2103_v63 = vrot.slane %v465_v41, %v460_v61  ;;  %p1654_p10 = scmp.ne.s32.totalorder %s2248_s21, %s1653_s28  ;;  %p1661_p0 = scmp.lt.s32.totalorder %s1659_s15, %s1653_s28 }
  0x79   : > { %v2097_v36 = vrot.slane %v415_v56, %v410_v1  ;;  %v2109_v1 = vrot.slane %v511_v35, %v510_v24 }
  0x7a   : > { %v2093_v48 = vrot.slane %v365_v23, %v360_v10  ;;  %v2111_v53 = vrot.slane %v515_v4, %v510_v24  ;;  %p1655_p12 = pnand %p1654_p10, %p1812_p5  ;;  %p1662_p1 = por %p1661_p0, %p1660_p11 }
  0x7c   : > { %p1656_p8 = pneg %p1655_p12 }
  0x7e   : > { %p1663_p3 = pnand %p1662_p1, %p1656_p8 }
  0xb2   : > { %v325_v39 = vpop.permute.xlu1 %324  ;;  %v345_v0 = vpop.permute.xlu0 %344 }
  0xb3   : > { %v378_v31 = vmul.f32 %v2091_v49, %v345_v0  ;;  %v379_v16 = vmul.f32 %v2093_v48, %v345_v0 }
  0xb5   : > { %v386_v13 = vadd.f32 %v378_v31, %v325_v39  ;;  %v387_v41 = vadd.f32 %v379_v16, %v325_v39 }
  0xb6   : > { %v330_v3 = vpop.permute.xlu1 %329  ;;  %v350_v2 = vpop.permute.xlu0 %349 }
  0xb7   : > { %v380_v10 = vmul.f32 %v2091_v49, %v350_v2  ;;  %v381_v23 = vmul.f32 %v2093_v48, %v350_v2 }
  0xb9   : > { %v388_v2 = vadd.f32 %v380_v10, %v330_v3  ;;  %v389_v26 = vadd.f32 %v381_v23, %v330_v3 }
  0xbb   : > { %v402_v52 = vpop.permute.xlu1 %401  ;;  %v398_v45 = vpop.permute.xlu0 %397 }
  0xbc   : > { %v428_v57 = vmul.f32 %v2095_v40, %v398_v45  ;;  %v429_v56 = vmul.f32 %v2097_v36, %v398_v45  ;;  %v430_v0 = vmul.f32 %v2095_v40, %v402_v52  ;;  %v431_v44 = vmul.f32 %v2097_v36, %v402_v52 }
  0xbe   : > { %v436_v62 = vadd.f32 %v428_v57, %v386_v13  ;;  %v437_v24 = vadd.f32 %v429_v56, %v387_v41  ;;  %v438_v52 = vadd.f32 %v430_v0, %v388_v2  ;;  %v439_v31 = vadd.f32 %v431_v44, %v389_v26 }
  0xc0   : > { %v448_v30 = vpop.permute.xlu1 %447  ;;  %v452_v60 = vpop.permute.xlu0 %451 }
  0xc1   : > { %v478_v61 = vmul.f32 %v2101_v34, %v448_v30  ;;  %v479_v28 = vmul.f32 %v2103_v63, %v448_v30  ;;  %v480_v25 = vmul.f32 %v2101_v34, %v452_v60  ;;  %v481_v45 = vmul.f32 %v2103_v63, %v452_v60 }
  0xc3   : > { %v486_v39 = vadd.f32 %v478_v61, %v436_v62  ;;  %v487_v16 = vadd.f32 %v479_v28, %v437_v24  ;;  %v488_v58 = vadd.f32 %v480_v25, %v438_v52  ;;  %v489_v55 = vadd.f32 %v481_v45, %v439_v31 }
  0xc5   : > { %v498_v35 = vpop.permute.xlu1 %497 }
  0xc6   : > { %v528_v4 = vmul.f32 %v2109_v1, %v498_v35  ;;  %v529_v59 = vmul.f32 %v2111_v53, %v498_v35  ;;  %v355_v0 = vpop.permute.xlu0 %354 }
  0xc7   : > { %v382_v25 = vmul.f32 %v2091_v49, %v355_v0  ;;  %v383_v28 = vmul.f32 %v2093_v48, %v355_v0 }
  0xc8   : > { %v536_v10 = vadd.f32 %v528_v4, %v486_v39  ;;  %v537_v60 = vadd.f32 %v529_v59, %v487_v16 }
  0xc9   : > { %v502_v30 = vpop.permute.xlu1 %501 }
  0xca   : > { %v530_v3 = vmul.f32 %v2109_v1, %v502_v30  ;;  %v531_v23 = vmul.f32 %v2111_v53, %v502_v30  ;;  %v544_v56 = vmax.f32 %v536_v10, 0.0  ;;  %v545_v41 = vmax.f32 %v537_v60, 0.0 }
  0xcb   : > { %v456_v59 = vpop.permute.xlu0 %455 }
  0xcc   : > { %v538_v54 = vadd.f32 %v530_v3, %v488_v58  ;;  %v539_v57 = vadd.f32 %v531_v23, %v489_v55  ;;  %v2386_v58 = vmov 0   ;;  %v482_v45 = vmul.f32 %v2101_v34, %v456_v59 }
  0xce   : > { %v546_v13 = vmax.f32 %v538_v54, 0.0  ;;  %v547_v51 = vmax.f32 %v539_v57, 0.0  ;;  %v335_v35 = vpop.permute.xlu1 %334 }
  0xcf   : > { %v390_v44 = vadd.f32 %v382_v25, %v335_v35  ;;  %v391_v61 = vadd.f32 %v383_v28, %v335_v35 }
  0xd0   : > { %v551_v26 = vpack.c.bf16 %v547_v51, %v545_v41  ;;  %v550_v62 = vpack.c.bf16 %v546_v13, %v544_v56  ;;  %v483_v51 = vmul.f32 %v2103_v63, %v456_v59  ;;  %v320_v3 = vpop.permute.xlu0 %319 }
  0xd2   : > { %776 = vmatprep.mubr.bf16.mxu0 %v551_v26 }
  0xd3   : > { %777 = vmatmul.mubr.bf16.vlgmr.msra.gmra.mxu0 %v550_v62  ;;  %v406_v2 = vpop.permute.xlu1 %405 }
  0xd4   : > { %1105 = vmatprep.mubr.bf16.mxu0 %v2386_v58  ;;  %v432_v54 = vmul.f32 %v2095_v40, %v406_v2  ;;  %v433_v55 = vmul.f32 %v2097_v36, %v406_v2 }
  0xd5   : > { %v494_v0 = vpop.permute.xlu0 %493 }
  0xd6   : > { %v440_v24 = vadd.f32 %v432_v54, %v390_v44  ;;  %v441_v4 = vadd.f32 %v433_v55, %v391_v61  ;;  %v2140_v55 = vld [vmem:[#allocation5 + $0x94] ss:$8 sps:$4 sm:$0xff]  }
  0xd7   : > { %1009 = vmatprep.subr.bf16.mxu1 %v2140_v55 }
  0xd8   : > { %v506_v52 = vpop.permute.xlu1 %505  ;;  %v490_v31 = vadd.f32 %v482_v45, %v440_v24  ;;  %v491_v39 = vadd.f32 %v483_v51, %v441_v4  ;;  %v2142_v45 = vld [vmem:[#allocation5 + $0x90] ss:$8 sps:$4 sm:$0xff]  }
  0xd9   : > { %v532_v61 = vmul.f32 %v2109_v1, %v506_v52  ;;  %v533_v2 = vmul.f32 %v2111_v53, %v506_v52  ;;  %1010 = vmatpush2.bf16.msra.mxu1 %v2142_v45 }
  0xdb   : > { %v541_v59 = vadd.f32 %v533_v2, %v491_v39  ;;  %v2418_v2 = vld [vmem:[#allocation42_spill] sm:$0xff] }
  0xdd   : > { %v340_v16 = vpop.permute.xlu1 %339  ;;  %v549_v39 = vmax.f32 %v541_v59, 0.0 }
  0xde   : > { %v376_v30 = vmul.f32 %v2091_v49, %v340_v16  ;;  %v377_v10 = vmul.f32 %v2093_v48, %v340_v16  ;;  %v526_v49 = vmul.f32 %v2109_v1, %v494_v0 }
  0xe0   : > { %v384_v23 = vadd.f32 %v376_v30, %v320_v3  ;;  %v385_v60 = vadd.f32 %v377_v10, %v320_v3 }
  0xe2   : > { %v394_v57 = vpop.permute.xlu1 %393 }
  0xe3   : > { %v426_v56 = vmul.f32 %v2095_v40, %v394_v57  ;;  %v427_v13 = vmul.f32 %v2097_v36, %v394_v57  ;;  %v527_v40 = vmul.f32 %v2111_v53, %v494_v0  ;;  %v540_v36 = vadd.f32 %v532_v61, %v490_v31  ;;  %v2404_v57 = vld [vmem:[#allocation22_spill] sm:$0xff]  ;;  %v2417_v61 = vld [vmem:[#allocation41_spill] sm:$0xff] }
  0xe4   : > { %v2409_v0 = vld [vmem:[#allocation30_spill] sm:$0xff] }
  0xe5   : > { %v434_v41 = vadd.f32 %v426_v56, %v384_v23  ;;  %v435_v35 = vadd.f32 %v427_v13, %v385_v60  ;;  %v548_v16 = vmax.f32 %v540_v36, 0.0  ;;  %v2402_v23 = vld [vmem:[#allocation20_spill] sm:$0xff]  ;;  %v2403_v60 = vld [vmem:[#allocation21_spill] sm:$0xff]  ;;  %v2405_v56 = vld [vmem:[#allocation23_spill] sm:$0xff] }
  0xe6   : > { %v2406_v13 = vld [vmem:[#allocation25_spill] sm:$0xff]  ;;  %v2420_v36 = vld [vmem:[#allocation44_spill] sm:$0xff] }
  0xe7   : > { %v444_v26 = vpop.permute.xlu1 %443 }
  0xe8   : > { %v476_v62 = vmul.f32 %v2101_v34, %v444_v26  ;;  %v477_v25 = vmul.f32 %v2103_v63, %v444_v26  ;;  %v2146_v34 = vld [vmem:[#allocation5 + $0x84] ss:$8 sps:$4 sm:$0xff]   ;;  %v2148_v63 = vld [vmem:[#allocation5 + $0x80] ss:$8 sps:$4 sm:$0xff]   ;;  %v2410_v26 = vld [vmem:[#allocation33_spill] sm:$0xff] }
  0xe9   : > { %1011 = vmatprep.subr.bf16.mxu1 %v2146_v34 }
  0xea   : > { %v484_v28 = vadd.f32 %v476_v62, %v434_v41  ;;  %v485_v48 = vadd.f32 %v477_v25, %v435_v35  ;;  %1012 = vmatpush2.bf16.msra.mxu1 %v2148_v63  ;;  %v2407_v41 = vld [vmem:[#allocation26_spill] sm:$0xff]  ;;  %v2408_v35 = vld [vmem:[#allocation29_spill] sm:$0xff]  ;;  %v2412_v25 = vld [vmem:[#allocation36_spill] sm:$0xff] }
  0xeb   : > { %1136 = vmatprep.subr.bf16.mxu1 %v1877_v5  ;;  %v2387_v5 = vld [vmem:[#allocation24_spill] sm:$0xff]  ;;  %v2411_v62 = vld [vmem:[#allocation34_spill] sm:$0xff] }
  0xec   : > { %v534_v44 = vadd.f32 %v526_v49, %v484_v28  ;;  %v535_v54 = vadd.f32 %v527_v40, %v485_v48  ;;  %v2413_v49 = vld [vmem:[#allocation37_spill] sm:$0xff]  ;;  %v2414_v28 = vld [vmem:[#allocation38_spill] sm:$0xff]  ;;  %v2415_v48 = vld [vmem:[#allocation39_spill] sm:$0xff] }
  0xed   : > { %v2419_v40 = vld [vmem:[#allocation43_spill] sm:$0xff] }
  0xee   : > { %v542_v1 = vmax.f32 %v534_v44, 0.0  ;;  %v543_v53 = vmax.f32 %v535_v54, 0.0  ;;  %v2416_v44 = vld [vmem:[#allocation40_spill] sm:$0xff] }
 0x193   : > { %v778_v51 = vpop.f32.mrf.mxu0 }
 0x194   : > { %v1024_v24 = vpack.c.bf16 %v778_v51, %v542_v1 }
 0x195   : > { %v780_v4 = vpop.f32.mrf.mxu0 }
 0x196   : > { %v1025_v52 = vpack.c.bf16 %v780_v4, %v543_v53 }
 0x197   : > { %v782_v31 = vpop.f32.mrf.mxu0 }
 0x198   : > { %v787_v3 = vpack.c.bf16 %v782_v31, %v548_v16 }
 0x199   : > { %v784_v30 = vpop.f32.mrf.mxu0 }
 0x19a   : > { %v788_v10 = vpack.c.bf16 %v784_v30, %v549_v39 }
 0x19c   : > { %1013 = vmatprep.mubr.bf16.mxu1 %v788_v10 }
 0x19d   : > { %1014 = vmatmul.mubr.bf16.vlgmr.msra.gmra.mxu1 %v787_v3 }
 0x19e   : > { %1137 = vmatpush1.bf16.msra.mxu1 %v1879_v6  ;;  %v2388_v6 = vld [vmem:[#allocation27_spill] sm:$0xff] }
 0x19f   : > { %1138 = vmatprep.subr.bf16.mxu1 %v1881_v7  ;;  %v2389_v7 = vld [vmem:[#allocation28_spill] sm:$0xff] }
 0x1a2   : > { %1139 = vmatpush1.bf16.msra.mxu1 %v1886_v8  ;;  %v2390_v8 = vld [vmem:[#allocation31_spill] sm:$0xff] }
 0x1a3   : > { %1140 = vmatprep.subr.bf16.mxu1 %v1888_v9  ;;  %v2391_v9 = vld [vmem:[#allocation32_spill] sm:$0xff] }
 0x1a6   : > { %1141 = vmatpush1.bf16.msra.mxu1 %v1894_v11  ;;  %v2392_v11 = vld [vmem:[#allocation35_spill] sm:$0xff] }
 0x1a7   : > { %1142 = vmatprep.subr.bf16.mxu1 %v1896_v12  ;;  %v1033_v12 = vld [vmem:[%s2303_s4 + $0x8] sm:$0xff] }
 0x1a8   : > { %1043 = vperm.xlu1 %1501, %v1033_v12  }
 0x1aa   : > { %1143 = vmatpush1.bf16.msra.mxu1 %v1901_v14  ;;  %v1035_v14 = vld [vmem:[%s2303_s4 + $0x18] sm:$0xff] }
 0x1ab   : > { %1144 = vmatprep.subr.bf16.mxu1 %v1904_v15  ;;  %v1034_v15 = vld [vmem:[%s2303_s4 + $0x10] sm:$0xff]  ;;  %1053 = vperm.xlu0 %1502, %v1035_v14  }
 0x1ac   : > { %1048 = vperm.xlu1 %1501, %v1034_v15  }
 0x1ae   : > { %1145 = vmatpush1.bf16.msra.mxu1 %v1909_v17  ;;  %v1032_v17 = vld [vmem:[%s2303_s4] sm:$0xff] }
 0x1af   : > { %1146 = vmatprep.subr.bf16.mxu1 %v1912_v18 }
 0x1b0   : > { %1038 = vperm.xlu1 %1501, %v1032_v17  }
 0x1b2   : > { %1147 = vmatpush1.bf16.msra.mxu1 %v1914_v19 }
 0x1b3   : > { %1148 = vmatprep.subr.bf16.mxu1 %v1917_v20 }
 0x1b6   : > { %1149 = vmatpush1.bf16.msra.mxu1 %v1920_v21 }
 0x1b7   : > { %1150 = vmatprep.subr.bf16.mxu1 %v1925_v22 }
 0x1ba   : > { %1151 = vmatpush1.bf16.msra.mxu1 %v1938_v27 }
 0x1bb   : > { %1152 = vmatprep.subr.bf16.mxu1 %v1944_v29  ;;  %v1599_v29 = vld [vmem:[%s2302_s3] sm:$0xff]  }
 0x1be   : > { %1153 = vmatpush2.bf16.msra.mxu1 %v1953_v32  ;;  %v2393_v32 = vld [vmem:[#allocation11_spill] sm:$0xff] }
 0x1bf   : > { %1154 = vmatprep.subr.bf16.mxu1 %v1955_v33  ;;  %v2394_v33 = vld [vmem:[#allocation12_spill] sm:$0xff] }
 0x1c2   : > { %1155 = vmatpush2.bf16.msra.mxu1 %v1968_v37  ;;  %v2395_v37 = vld [vmem:[#allocation13_spill] sm:$0xff] }
 0x1c3   : > { %1156 = vmatprep.subr.bf16.mxu1 %v1971_v38  ;;  %v1600_v38 = vld [vmem:[%s2302_s3 + $0x8] sm:$0xff]  }
 0x1c6   : > { %1157 = vmatpush2.bf16.msra.mxu1 %v1987_v42  ;;  %v2396_v42 = vld [vmem:[#allocation14_spill] sm:$0xff] }
 0x1c7   : > { %1158 = vmatprep.subr.bf16.mxu1 %v1991_v43  ;;  %v2397_v43 = vld [vmem:[#allocation15_spill] sm:$0xff] }
 0x1ca   : > { %1159 = vmatpush2.bf16.msra.mxu1 %v2001_v46  ;;  %v2398_v46 = vld [vmem:[#allocation16_spill] sm:$0xff] }
 0x1cb   : > { %1160 = vmatprep.subr.bf16.mxu1 %v2004_v47  ;;  %v2399_v47 = vld [vmem:[#allocation17_spill] sm:$0xff] }
 0x1ce   : > { %1161 = vmatpush2.bf16.msra.mxu1 %v2015_v50  ;;  %v2400_v50 = vld [vmem:[#allocation18_spill] sm:$0xff] }
 0x1cf   : > { %1162 = vmatprep.subr.bf16.mxu1 %v2387_v5 }
 0x1d2   : > { %1163 = vmatpush2.bf16.msra.mxu1 %v2388_v6 }
 0x1d3   : > { %1164 = vmatprep.subr.bf16.mxu1 %v2389_v7 }
 0x1d6   : > { %1165 = vmatpush2.bf16.msra.mxu1 %v2390_v8 }
 0x1d7   : > { %1166 = vmatprep.subr.bf16.mxu1 %v2391_v9 }
 0x1da   : > { %1167 = vmatpush2.bf16.msra.mxu1 %v2392_v11 }
 0x223   : > { %v1044_v59 = vpop.permute.xlu1 %1043 }
 0x226   : > { %v1054_v14 = vpop.permute.xlu0 %1053 }
 0x227   : > { %v1049_v54 = vpop.permute.xlu1 %1048 }
 0x22b   : > { %v1039_v1 = vpop.permute.xlu1 %1038 }
 0x25d   : > { %v1015_v18 = vpop.f32.mrf.mxu1 }
 0x25f   : > { %v1017_v19 = vpop.f32.mrf.mxu1 }
 0x261   : > { %v1019_v20 = vpop.f32.mrf.mxu1 }
 0x262   : > { %v1026_v27 = vpack.c.bf16 %v1015_v18, %v1019_v20 }
 0x263   : > { %v1021_v21 = vpop.f32.mrf.mxu1 }
 0x264   : > { %v1027_v22 = vpack.c.bf16 %v1017_v19, %v1021_v21 }
 0x266   : > { %1085 = vmatprep.subr.bf16.mxu0 %v1027_v22 }
 0x267   : > { %1086 = vmatpush1.bf16.msra.mxu0 %v1026_v27 }
 0x268   : > { %1087 = vmatprep.subr.bf16.mxu0 %v1025_v52 }
 0x26b   : > { %1088 = vmatpush1.bf16.msra.mxu0 %v1024_v24 }
 0x26c   : > { %1181 = vmatprep.subr.bf16.mxu0 %v2393_v32 }
 0x26e   : > { %1407 = vmatmul.mubr.msk.bf16.vlgmr.msra.gmra.mxu0 %vm1066_vm0, %v1599_v29 }
 0x26f   : > { %1115 = vmatprep.mubr.bf16.mxu0 %v2386_v58  ;;  %1182 = vmatpush1.bf16.msra.mxu0 %v2394_v33  ;;  %v2401_v58 = vld [vmem:[#allocation19_spill] sm:$0xff] }
 0x270   : > { %1183 = vmatprep.subr.bf16.mxu0 %v2395_v37 }
 0x273   : > { %1184 = vmatpush1.bf16.msra.mxu0 %v2396_v42 }
 0x274   : > { %1185 = vmatprep.subr.bf16.mxu0 %v2397_v43 }
 0x276   : > { %1408 = vmatmul.mubr.msk.bf16.gmra.mxu0 %vm1066_vm0, %v1600_v38 }
 0x277   : > { %1186 = vmatpush1.bf16.msra.mxu0 %v2398_v46 }
 0x278   : > { %1187 = vmatprep.subr.bf16.mxu0 %v2399_v47 }
 0x27b   : > { %1188 = vmatpush1.bf16.msra.mxu0 %v2400_v50 }
 0x27c   : > { %1189 = vmatprep.subr.bf16.mxu0 %v2401_v58 }
 0x27f   : > { %1190 = vmatpush1.bf16.msra.mxu0 %v2402_v23 }
 0x280   : > { %1191 = vmatprep.subr.bf16.mxu0 %v2403_v60 }
 0x283   : > { %1192 = vmatpush1.bf16.msra.mxu0 %v2404_v57 }
 0x284   : > { %1193 = vmatprep.subr.bf16.mxu0 %v2405_v56 }
 0x287   : > { %1194 = vmatpush1.bf16.msra.mxu0 %v2406_v13 }
 0x288   : > { %1195 = vmatprep.subr.bf16.mxu0 %v2407_v41 }
 0x28b   : > { %1196 = vmatpush1.bf16.msra.mxu0 %v2408_v35 }
 0x28c   : > { %1197 = vmatprep.subr.bf16.mxu0 %v2409_v0 }
 0x28f   : > { %1198 = vmatpush2.bf16.msra.mxu0 %v2410_v26 }
 0x290   : > { %1199 = vmatprep.subr.bf16.mxu0 %v2411_v62 }
 0x293   : > { %1200 = vmatpush2.bf16.msra.mxu0 %v2412_v25 }
 0x294   : > { %1201 = vmatprep.subr.bf16.mxu0 %v2413_v49 }
 0x297   : > { %1202 = vmatpush2.bf16.msra.mxu0 %v2414_v28 }
 0x298   : > { %1203 = vmatprep.subr.bf16.mxu0 %v2415_v48 }
 0x29b   : > { %1204 = vmatpush2.bf16.msra.mxu0 %v2416_v44 }
 0x29c   : > { %1205 = vmatprep.subr.bf16.mxu0 %v2417_v61 }
 0x29f   : > { %1206 = vmatpush2.bf16.msra.mxu0 %v2418_v2 }
 0x2a0   : > { %1207 = vmatprep.subr.bf16.mxu0 %v2419_v40 }
 0x2a3   : > { %1208 = vmatpush2.bf16.msra.mxu0 %v2420_v36 }
 0x2a4   : > { %1209 = vmatprep.subr.bf16.mxu0 %v2140_v55 }
 0x2a7   : > { %1210 = vmatpush2.bf16.msra.mxu0 %v2142_v45 }
 0x2a8   : > { %1211 = vmatprep.subr.bf16.mxu0 %v2146_v34 }
 0x2ab   : > { %1212 = vmatpush2.bf16.msra.mxu0 %v2148_v63 }
 0x32e   : > { %v1107_v53 = vpop.f32.mrf.mxu0 }
 0x32f   : > { %v1108_v51 = vadd.f32 %v1107_v53, %v1039_v1 }
 0x330   : > { %v1109_v24 = vpop.f32.mrf.mxu0 }
 0x331   : > { %v1126_v4 = vmax.f32 %v1108_v51, 0.0  ;;  %v1110_v52 = vadd.f32 %v1109_v24, %v1039_v1 }
 0x332   : > { %v1111_v31 = vpop.f32.mrf.mxu0 }
 0x333   : > { %1224 = vst [vmem:[%s2238_s20] sm:$0xff] %v1126_v4  ;;  %v1127_v55 = vmax.f32 %v1110_v52, 0.0  ;;  %v1112_v16 = vadd.f32 %v1111_v31, %v1044_v59 }
 0x334   : > { %v1113_v45 = vpop.f32.mrf.mxu0 }
 0x335   : > { %1225 = vst [vmem:[%s2238_s20 + $0x8] sm:$0xff] %v1127_v55  ;;  %v1114_v63 = vadd.f32 %v1113_v45, %v1044_v59  ;;  %v1128_v7 = vmax.f32 %v1112_v16, 0.0 }
 0x336   : > { %v1117_v34 = vpop.f32.mrf.mxu0 }
 0x337   : > { %v1118_v39 = vadd.f32 %v1117_v34, %v1049_v54  ;;  %v1129_v5 = vmax.f32 %v1114_v63, 0.0 }
 0x338   : > { %v1119_v30 = vpop.f32.mrf.mxu0 }
 0x339   : > { %v1120_v10 = vadd.f32 %v1119_v30, %v1049_v54  ;;  %v1130_v3 = vmax.f32 %v1118_v39, 0.0 }
 0x33a   : > { %v1121_v11 = vpop.f32.mrf.mxu0 }
 0x33b   : > { %v1131_v6 = vmax.f32 %v1120_v10, 0.0  ;;  %v1134_v9 = vpack.c.bf16 %v1130_v3, %v1128_v7  ;;  %v1122_v18 = vadd.f32 %v1121_v11, %v1054_v14 }
 0x33c   : > { %v1123_v12 = vpop.f32.mrf.mxu0 }
 0x33d   : > { %v1135_v8 = vpack.c.bf16 %v1131_v6, %v1129_v5  ;;  %v1124_v17 = vadd.f32 %v1123_v12, %v1054_v14  ;;  %v1132_v22 = vmax.f32 %v1122_v18, 0.0 }
 0x33f   : > { %1168 = vmatprep.mubr.bf16.mxu1 %v1135_v8  ;;  %v1133_v21 = vmax.f32 %v1124_v17, 0.0 }
 0x340   : > { %1169 = vmatmul.mubr.bf16.vlgmr.msra.gmra.mxu1 %v1134_v9 }
 0x400   : > { %v1170_v15 = vpop.f32.mrf.mxu1 }
 0x401   : > { %1226 = vst [vmem:[%s2238_s20 + $0x10] sm:$0xff] %v1170_v15 }
 0x402   : > { %v1172_v19 = vpop.f32.mrf.mxu1 }
 0x403   : > { %1227 = vst [vmem:[%s2238_s20 + $0x18] sm:$0xff] %v1172_v19 }
 0x404   : > { %v1174_v20 = vpop.f32.mrf.mxu1 }
 0x405   : > { %v1179_v32 = vpack.c.bf16 %v1174_v20, %v1132_v22 }
 0x406   : > { %v1176_v27 = vpop.f32.mrf.mxu1 }
 0x407   : > { %v1180_v29 = vpack.c.bf16 %v1176_v27, %v1133_v21 }
 0x409   : > { %1213 = vmatprep.mubr.bf16.mxu0 %v1180_v29 }
 0x40a   : > { %1214 = vmatmul.mubr.bf16.vlgmr.msra.gmra.mxu0 %v1179_v32 }
 0x4ca   : > { %v1215_v33 = vpop.f32.mrf.mxu0 }
 0x4cb   : > { %1230 = vst [vmem:[%s2238_s20 + $0x30] sm:$0xff] %v1215_v33 }
 0x4cc   : > { %v1217_v37 = vpop.f32.mrf.mxu0 }
 0x4cd   : > { %1231 = vst [vmem:[%s2238_s20 + $0x38] sm:$0xff] %v1217_v37 }
 0x4ce   : > { %v1219_v38 = vpop.f32.mrf.mxu0 }
 0x4cf   : > { %1228 = vst [vmem:[%s2238_s20 + $0x20] sm:$0xff] %v1219_v38 }
 0x4d0   : > { %v1221_v42 = vpop.f32.mrf.mxu0 }
 0x4d1   : > { %1229 = vst [vmem:[%s2238_s20 + $0x28] sm:$0xff] %v1221_v42 }
 0x4d2   : > { %1666 = shalt.err (!%p1663_p3)
}
 0x4d3   : > { %s1667_s16 = scalar_lea.hbm %s2253_s8, 1024  ;;  %s1671_s19 = scalar_lea.hbm %s2306_s7, 2048 }
 0x4d4   : > { %p1668_p2 = scmp.ne.s32.totalorder %s2253_s8, %s1667_s16  ;;  %p1672_p7 = scmp.lt.s32.totalorder %s2253_s8, %s2306_s7 }
 0x4d5   : > { %p1673_p6 = scmp.lt.s32.totalorder %s1671_s19, %s1667_s16 }
 0x4d6   : > { %p1669_p4 = pnand %p1668_p2, %p1812_p5 }
 0x4d7   : > { %p1674_p9 = por %p1673_p6, %p1672_p7 }
 0x4d8   : > { %p1670_p13 = pneg %p1669_p4 }
 0x4da   : > { %p1675_p10 = pnand %p1674_p9, %p1670_p13 }
 0x4dc   : > { %1678 = shalt.err (!%p1675_p10)
}
 0x4dd   : > { %s1732_s23 = smov 256   ;;  %s1733_s29 = smov 16  }
 0x4de   : > { %1424 = dma.vmem_to_hbm [thread:$0]  (%p1812_p5), %s2248_s21, 1024, %s2253_s8, %s2259_s9, %s1732_s23, %s1732_s23, %s1733_s29  }
 0x4df PF: > { %p1441_p12 = scmp.ge.s32.totalorder %s1721_s27, 2  ;;  %s1261_s28 = sand.u32 1, %s1709_s24  }
 0x4e0   : > { %p2421_p8 = scmp.ne.s32.totalorder %s2345_s12, 0  ;;  %s1262_s14 = scalar_lea.sflag [#allocation4], %s1261_s28 }
 0x4e2   : > { %p1434_p11 = pnand %p1441_p12, %p2421_p8 }
 0x4e4   : > { %p1435_p0 = pneg %p1434_p11 }
 0x4e6   : > { %1704 = dma.done.wait (%p1435_p0), %s1262_s14, 1024  }
 0x4e7   : > { %1706 = vsyncadd (%p1435_p0), %s1262_s14, 4294966272  ;;  %p19_p1 = scmp.ge.s32.totalorder %s1799_s30, 4   ;;  %s2422_s24 = smov %s1713_s25 }
 0x4e8   : > { %s2423_s25 = smov %s1717_s26  ;;  %s2424_s26 = smov %s1810_s10 }
 0x4e9   : > { %s2425_s27 = smov %s1799_s30  ;;  %21 = sbr.rel (!%p19_p1) target bundleno = 5 (0x5), region = 92 }
 0x4ee   :  { %1267 = vsyncpa [#allocation3], 1 }
 0x4ef   :  { %1269 = vsyncpa [#allocation3 + $0x1], 1 }
 0x4f0   :  { %1270 = vsyncpa [#allocation6], 1 }
 0x4f1   :  { %1271 = vsyncpa [#allocation4], 1 }
 0x4f2   :  { %1273 = vsyncpa [#allocation4 + $0x1], 1 }

</bundles_post_ra>
